<compile_context>
chip_gen: v7x
topology: tpu7x:2x2x1
jax: 0.10.0
libtpu: 0.0.40
codegen_flags: <defaults>
</compile_context>

<pallas_src>
import numpy as np
import jax
import jax.numpy as jnp
from jax import lax
from jax.experimental import pallas as pl
from jax.experimental.pallas import tpu as pltpu


# ----------------------------------------------------------------------------
# Pallas kernel: fully fused ReductionBlock forward, one (batch, P-tile) step.
# ----------------------------------------------------------------------------
def reduction_block_kernel(patch_ref, shift1_ref, w1_ref, w2_ref,
                           alpha1_ref, shift2_ref, alpha2_ref, bias6_ref,
                           out_ref):
    # patch_ref  : (9C, TP)  im2col taps of raw x (zero-padded), tap-major.
    # shift1_ref : (C,  TP)  per-pixel shift = bn1(conv1(bias1)) border term
    #                        + bn1 shift + bias2, f32.
    # w1_ref     : (C,  9C)  fused conv1 weight^T: bn1-scale * W1 + 0.25*I on
    #                        the 2x2 avg-pool taps.
    # w2_ref     : (2C, C )  fused [conv2_1|conv2_2] weight^T with bn2 scale
    #                        and the identity residual folded in.
    # alpha1_ref : (C,  1 )  PReLU1 slope.
    # shift2_ref : (2C, 1 )  folded bias3/bias4/bn2-shift/bias5.
    # alpha2_ref : (2C, 1 )  PReLU2 slope.
    # bias6_ref  : (2C, 1 )
    # out_ref    : (2C, TP)  f32, NCHW-flattened output tile.

    # stage 1: conv1 + bn1 + avg-pool residual + bias1 + bias2 (one matmul)
    a = jnp.dot(w1_ref[...], patch_ref[...],
                preferred_element_type=jnp.float32) + shift1_ref[...]
    # PReLU1
    pr = jnp.where(a >= 0.0, a, alpha1_ref[...] * a)
    # stage 2: both 1x1 convs + bn2_* + residual adds + bias3/4/5 (one matmul)
    z = jnp.dot(w2_ref[...], pr.astype(w2_ref.dtype),
                preferred_element_type=jnp.float32) + shift2_ref[...]
    # PReLU2 + bias6
    out = jnp.where(z >= 0.0, z, alpha2_ref[...] * z) + bias6_ref[...]
    out_ref[...] = out.astype(out_ref.dtype)


# ----------------------------------------------------------------------------
# Wrapper: layout glue, parameter folding, pallas_call.
# ----------------------------------------------------------------------------
def _fold_bn(gamma, beta, mean, var, eps=1e-5):
    scale = gamma / jnp.sqrt(var + eps)
    return scale, beta - mean * scale


def _choose_tp(P, max_tp):
    """Pick a spatial (lane) tile: divides P, multiple of 128 when tiling."""
    if P <= max_tp:
        return P
    tp = (max_tp // 128) * 128
    while tp >= 128:
        if P % tp == 0:
            return tp
        tp -= 128
    return P


def reduction_block_forward(x_nchw, p, *, compute_dtype=jnp.bfloat16,
                            max_tp=1024):
    N, C, H, W = x_nchw.shape
    assert H % 2 == 0 and W % 2 == 0, "stride-2 block requires even H, W"
    Ho, Wo = H // 2, W // 2
    P = Ho * Wo
    TP = _choose_tp(P, max_tp)

    x = x_nchw.astype(jnp.float32)

    # --- im2col of the 3x3 / stride-2 window, channel-major (tap, cin) -------
    xp = jnp.pad(x, ((0, 0), (0, 0), (1, 1), (1, 1)))            # NCHW padded
    cols = [xp[:, :, kh:kh + 2 * Ho:2, kw:kw + 2 * Wo:2]
            for kh in range(3) for kw in range(3)]
    patches = (jnp.stack(cols, axis=1)                           # (N,9,C,Ho,Wo)
               .reshape(N, 9 * C, P).astype(compute_dtype))      # (N,9C,P)

    # --- fold BN stats --------------------------------------------------------
    s1, t1 = _fold_bn(p['bn1_g'], p['bn1_b'], p['bn1_m'], p['bn1_v'])
    s21, t21 = _fold_bn(p['bn21_g'], p['bn21_b'], p['bn21_m'], p['bn21_v'])
    s22, t22 = _fold_bn(p['bn22_g'], p['bn22_b'], p['bn22_m'], p['bn22_v'])

    # --- stage-1 fused weight: bn1-scaled conv1 + avg-pool identity ----------
    w1flat = jnp.transpose(p['w1'], (2, 3, 1, 0)).reshape(9 * C, C)  # (9C, C)
    psel = (jnp.zeros((9, C, C), jnp.float32)
            .at[jnp.array([4, 5, 7, 8])].set(0.25 * jnp.eye(C))
            .reshape(9 * C, C))                                   # pool taps
    w1eff = w1flat * s1[None, :] + psel
    w1effT = w1eff.T.astype(compute_dtype)                        # (C, 9C)

    # --- stage-1 per-pixel shift: bias1 (border-corrected) + bn1 shift + bias2
    biasW = jnp.einsum('i,oihw->hwo', p['bias1'], p['w1']).reshape(9, C)
    ktap = jnp.arange(9)
    kh = (ktap // 3)[:, None, None]
    kw = (ktap % 3)[:, None, None]
    oh = jnp.arange(Ho)[None, :, None]
    ow = jnp.arange(Wo)[None, None, :]
    r = 2 * oh + kh - 1
    c = 2 * ow + kw - 1
    validf = (((r >= 0) & (r < H) & (c >= 0) & (c < W))
              .astype(jnp.float32).reshape(9, P))                 # (9, P)
    b1corr = jnp.einsum('kp,kc->pc', validf, biasW)               # (P, C)
    shift1T = (b1corr * s1[None, :] + t1[None, :]
               + p['bias2'][None, :]).T.astype(jnp.float32)       # (C, P)

    # --- stage-2 fused weight / shift ----------------------------------------
    w21m = p['w21'][:, :, 0, 0].T                                 # (Cin, Cout)
    w22m = p['w22'][:, :, 0, 0].T
    w2cat = jnp.concatenate([w21m, w22m], axis=1)                 # (C, 2C)
    s2 = jnp.concatenate([s21, s22])
    t2 = jnp.concatenate([t21, t22])
    w2s = w2cat * s2[None, :]
    eye2 = jnp.concatenate([jnp.eye(C), jnp.eye(C)], axis=1)      # residual
    w2eff = eye2 + w2s
    w2effT = w2eff.T.astype(compute_dtype)                        # (2C, C)
    shift2 = (p['bias3'] @ w2eff + p['bias4'] @ w2s + t2 + p['bias5'])
    shift2c = shift2[:, None].astype(jnp.float32)                 # (2C, 1)

    alpha1c = p['alpha1'][:, None].astype(jnp.float32)            # (C, 1)
    alpha2c = p['alpha2'][:, None].astype(jnp.float32)            # (2C, 1)
    bias6c = p['bias6'][:, None].astype(jnp.float32)              # (2C, 1)

    grid = (N, P // TP)
    out = pl.pallas_call(
        reduction_block_kernel,
        out_shape=jax.ShapeDtypeStruct((N, 2 * C, P), jnp.float32),
        grid=grid,
        in_specs=[
            pl.BlockSpec((None, 9 * C, TP), lambda b, pt: (b, 0, pt)),
            pl.BlockSpec((C, TP), lambda b, pt: (0, pt)),
            pl.BlockSpec((C, 9 * C), lambda b, pt: (0, 0)),
            pl.BlockSpec((2 * C, C), lambda b, pt: (0, 0)),
            pl.BlockSpec((C, 1), lambda b, pt: (0, 0)),
            pl.BlockSpec((2 * C, 1), lambda b, pt: (0, 0)),
            pl.BlockSpec((2 * C, 1), lambda b, pt: (0, 0)),
            pl.BlockSpec((2 * C, 1), lambda b, pt: (0, 0)),
        ],
        out_specs=pl.BlockSpec((None, 2 * C, TP), lambda b, pt: (b, 0, pt)),
        compiler_params=pltpu.CompilerParams(
            dimension_semantics=("parallel", "parallel"),
            vmem_limit_bytes=48 * 1024 * 1024),
    )(patches, shift1T, w1effT, w2effT, alpha1c, shift2c, alpha2c, bias6c)

    # (N, 2C, Ho*Wo) -> (N, 2C, Ho, Wo): pure reshape, no transpose needed.
    return out.reshape(N, 2 * C, Ho, Wo)


# ----------------------------------------------------------------------------
# Deterministic parameter initialization (shapes from the module __init__).
# ----------------------------------------------------------------------------
def init_params(key, C):
    ks = jax.random.split(key, 24)
    v = lambda k, n, s=0.2: s * jax.random.normal(k, (n,), jnp.float32)
    return {
        'bias1': v(ks[0], C),
        'w1': 0.3 * jax.random.normal(ks[1], (C, C, 3, 3), jnp.float32),
        'bn1_g': 1.0 + 0.1 * jax.random.normal(ks[2], (C,), jnp.float32),
        'bn1_b': v(ks[3], C),
        'bn1_m': v(ks[4], C),
        'bn1_v': 0.5 + jax.random.uniform(ks[5], (C,), jnp.float32),
        'bias2': v(ks[6], C),
        'alpha1': 0.25 * jnp.ones((C,), jnp.float32),   # PReLU default init
        'bias3': v(ks[7], C),
        'bias4': v(ks[8], C),
        'w21': 0.3 * jax.random.normal(ks[9], (C, C, 1, 1), jnp.float32),
        'w22': 0.3 * jax.random.normal(ks[10], (C, C, 1, 1), jnp.float32),
        'bn21_g': 1.0 + 0.1 * jax.random.normal(ks[11], (C,), jnp.float32),
        'bn21_b': v(ks[12], C),
        'bn21_m': v(ks[13], C),
        'bn21_v': 0.5 + jax.random.uniform(ks[14], (C,), jnp.float32),
        'bn22_g': 1.0 + 0.1 * jax.random.normal(ks[15], (C,), jnp.float32),
        'bn22_b': v(ks[16], C),
        'bn22_m': v(ks[17], C),
        'bn22_v': 0.5 + jax.random.uniform(ks[18], (C,), jnp.float32),
        'bias5': v(ks[19], 2 * C),
        'alpha2': 0.25 * jnp.ones((2 * C,), jnp.float32),
        'bias6': v(ks[20], 2 * C),
    }


# ----------------------------------------------------------------------------
# Pure-JAX reference (mirrors the PyTorch forward, NCHW) for validation.
# ----------------------------------------------------------------------------
def ref_forward(x, p, eps=1e-5):
    def addc(y, b):
        return y + b[None, :, None, None]

    def bn(y, g, b, m, var):
        return (g[None, :, None, None] * (y - m[None, :, None, None])
                / jnp.sqrt(var[None, :, None, None] + eps)
                + b[None, :, None, None])

    def prelu(y, a):
        return jnp.where(y >= 0, y, a[None, :, None, None] * y)

    dn = ('NCHW', 'OIHW', 'NCHW')
    out1 = lax.conv_general_dilated(addc(x, p['bias1']), p['w1'],
                                    window_strides=(2, 2),
                                    padding=((1, 1), (1, 1)),
                                    dimension_numbers=dn)
    out1 = bn(out1, p['bn1_g'], p['bn1_b'], p['bn1_m'], p['bn1_v'])
    N, C, H, W = x.shape
    xpool = x.reshape(N, C, H // 2, 2, W // 2, 2).mean(axis=(3, 5))
    out1 = xpool + out1
    out1 = addc(prelu(addc(out1, p['bias2']), p['alpha1']), p['bias3'])
    out2 = addc(out1, p['bias4'])
    o21 = bn(lax.conv_general_dilated(out2, p['w21'], (1, 1), 'VALID',
                                      dimension_numbers=dn),
             p['bn21_g'], p['bn21_b'], p['bn21_m'], p['bn21_v'])
    o22 = bn(lax.conv_general_dilated(out2, p['w22'], (1, 1), 'VALID',
                                      dimension_numbers=dn),
             p['bn22_g'], p['bn22_b'], p['bn22_m'], p['bn22_v'])
    o21 = out1 + o21
    o22 = out1 + o22
    cat = jnp.concatenate([o21, o22], axis=1)
    return addc(prelu(addc(cat, p['bias5']), p['alpha2']), p['bias6'])


def _check(name, out, ref, rtol, atol):
    o = np.asarray(out)
    r = np.asarray(ref)
    if not np.allclose(o, r, rtol=rtol, atol=atol):
        raise AssertionError(
            f"{name}: mismatch vs reference, max abs diff = "
            f"{float(np.max(np.abs(o - r)))}")


if __name__ == "__main__":
    key = jax.random.PRNGKey(0)
    kx, kp, kx2, kp2 = jax.random.split(key, 4)

    # --- small config: f32 (tight check) and bf16 (reduced-precision check) --
    N, C, H, W = 2, 4, 16, 16
    x = jax.random.normal(kx, (N, C, H, W), jnp.float32)
    params = init_params(kp, C)
    ref = jax.block_until_ready(ref_forward(x, params))

    out_f32 = jax.block_until_ready(
        reduction_block_forward(x, params, compute_dtype=jnp.float32))
    assert out_f32.shape == (N, 2 * C, H // 2, W // 2), out_f32.shape
    _check("f32", out_f32, ref, rtol=1e-3, atol=1e-3)

    out_bf16 = jax.block_until_ready(
        reduction_block_forward(x, params, compute_dtype=jnp.bfloat16))
    _check("bf16", out_bf16, ref, rtol=1e-1, atol=1e-1)

    # --- larger config: exercises the P-tiling grid axis (P=4096, TP=1024) ---
    N2, C2, H2, W2 = 1, 8, 128, 128
    x2 = jax.random.normal(kx2, (N2, C2, H2, W2), jnp.float32)
    params2 = init_params(kp2, C2)
    ref2 = jax.block_until_ready(ref_forward(x2, params2))
    out2 = jax.block_until_ready(
        reduction_block_forward(x2, params2, compute_dtype=jnp.float32))
    assert out2.shape == (N2, 2 * C2, H2 // 2, W2 // 2), out2.shape
    _check("f32-tiled", out2, ref2, rtol=1e-3, atol=1e-3)

    print("KERNEL_OK")
</pallas_src>

<mosaic_0001>
module attributes {stable_mosaic.version = 11 : i64} {
  func.func @reduction_block_kernel(%arg0: i32, %arg1: i32, %arg2: memref<1x36x64xf32, #tpu.memory_space<vmem>>, %arg3: memref<4x64xf32, #tpu.memory_space<vmem>>, %arg4: memref<4x36xf32, #tpu.memory_space<vmem>>, %arg5: memref<8x4xf32, #tpu.memory_space<vmem>>, %arg6: memref<4x1xf32, #tpu.memory_space<vmem>>, %arg7: memref<8x1xf32, #tpu.memory_space<vmem>>, %arg8: memref<8x1xf32, #tpu.memory_space<vmem>>, %arg9: memref<8x1xf32, #tpu.memory_space<vmem>>, %arg10: memref<1x8x64xf32, #tpu.memory_space<vmem>>) attributes {dimension_semantics = [#tpu.dimension_semantics<parallel>, #tpu.dimension_semantics<parallel>], iteration_bounds = array<i64: 2, 1>, scalar_prefetch = 0 : i64, scratch_operands = 0 : i64, tpu.core_type = #tpu.core_type<tc>, window_params = [{transform_indices = @transform_0, window_bounds = array<i64: 1, 36, 64>}, {transform_indices = @transform_1, window_bounds = array<i64: 4, 64>}, {pipeline_mode = #tpu.pipeline_mode<synchronous>, transform_indices = @transform_2, window_bounds = array<i64: 4, 36>}, {pipeline_mode = #tpu.pipeline_mode<synchronous>, transform_indices = @transform_3, window_bounds = array<i64: 8, 4>}, {pipeline_mode = #tpu.pipeline_mode<synchronous>, transform_indices = @transform_4, window_bounds = array<i64: 4, 1>}, {pipeline_mode = #tpu.pipeline_mode<synchronous>, transform_indices = @transform_5, window_bounds = array<i64: 8, 1>}, {pipeline_mode = #tpu.pipeline_mode<synchronous>, transform_indices = @transform_6, window_bounds = array<i64: 8, 1>}, {pipeline_mode = #tpu.pipeline_mode<synchronous>, transform_indices = @transform_7, window_bounds = array<i64: 8, 1>}, {transform_indices = @transform_8, window_bounds = array<i64: 1, 8, 64>}]} {
    %c0 = arith.constant 0 : index
    %c0_0 = arith.constant 0 : index
    %0 = vector.load %arg4[%c0, %c0_0] : memref<4x36xf32, #tpu.memory_space<vmem>>, vector<4x36xf32>
    %c0_1 = arith.constant 0 : index
    %c0_2 = arith.constant 0 : index
    %c0_3 = arith.constant 0 : index
    %1 = vector.load %arg2[%c0_1, %c0_2, %c0_3] : memref<1x36x64xf32, #tpu.memory_space<vmem>>, vector<1x36x64xf32>
    %2 = vector.shape_cast %1 : vector<1x36x64xf32> to vector<36x64xf32>
    %cst = arith.constant dense<0.000000e+00> : vector<4x64xf32>
    %3 = tpu.matmul %0, %2, %cst {dimension_numbers = #tpu.dot_dimension_numbers<[1], [0], [0], [1], [0, 0, 1, 1], [], []>} : vector<4x36xf32>, vector<36x64xf32>, vector<4x64xf32> -> vector<4x64xf32>
    %c0_4 = arith.constant 0 : index
    %c0_5 = arith.constant 0 : index
    %4 = vector.load %arg3[%c0_4, %c0_5] : memref<4x64xf32, #tpu.memory_space<vmem>>, vector<4x64xf32>
    %5 = arith.addf %3, %4 : vector<4x64xf32>
    %cst_6 = arith.constant 0.000000e+00 : f32
    %6 = vector.broadcast %cst_6 : f32 to vector<4x64xf32>
    %7 = arith.cmpf oge, %5, %6 : vector<4x64xf32>
    %c0_7 = arith.constant 0 : index
    %c0_8 = arith.constant 0 : index
    %8 = vector.load %arg6[%c0_7, %c0_8] : memref<4x1xf32, #tpu.memory_space<vmem>>, vector<4x1xf32>
    %9 = vector.broadcast %8 : vector<4x1xf32> to vector<4x64xf32>
    %10 = arith.mulf %9, %5 : vector<4x64xf32>
    %11 = arith.select %7, %5, %10 : vector<4x64xi1>, vector<4x64xf32>
    %c0_9 = arith.constant 0 : index
    %c0_10 = arith.constant 0 : index
    %12 = vector.load %arg5[%c0_9, %c0_10] : memref<8x4xf32, #tpu.memory_space<vmem>>, vector<8x4xf32>
    %cst_11 = arith.constant dense<0.000000e+00> : vector<8x64xf32>
    %13 = tpu.matmul %12, %11, %cst_11 {dimension_numbers = #tpu.dot_dimension_numbers<[1], [0], [0], [1], [0, 0, 1, 1], [], []>} : vector<8x4xf32>, vector<4x64xf32>, vector<8x64xf32> -> vector<8x64xf32>
    %c0_12 = arith.constant 0 : index
    %c0_13 = arith.constant 0 : index
    %14 = vector.load %arg7[%c0_12, %c0_13] : memref<8x1xf32, #tpu.memory_space<vmem>>, vector<8x1xf32>
    %15 = vector.broadcast %14 : vector<8x1xf32> to vector<8x64xf32>
    %16 = arith.addf %13, %15 : vector<8x64xf32>
    %cst_14 = arith.constant 0.000000e+00 : f32
    %17 = vector.broadcast %cst_14 : f32 to vector<8x64xf32>
    %18 = arith.cmpf oge, %16, %17 : vector<8x64xf32>
    %c0_15 = arith.constant 0 : index
    %c0_16 = arith.constant 0 : index
    %19 = vector.load %arg8[%c0_15, %c0_16] : memref<8x1xf32, #tpu.memory_space<vmem>>, vector<8x1xf32>
    %20 = vector.broadcast %19 : vector<8x1xf32> to vector<8x64xf32>
    %21 = arith.mulf %20, %16 : vector<8x64xf32>
    %22 = arith.select %18, %16, %21 : vector<8x64xi1>, vector<8x64xf32>
    %c0_17 = arith.constant 0 : index
    %c0_18 = arith.constant 0 : index
    %23 = vector.load %arg9[%c0_17, %c0_18] : memref<8x1xf32, #tpu.memory_space<vmem>>, vector<8x1xf32>
    %24 = vector.broadcast %23 : vector<8x1xf32> to vector<8x64xf32>
    %25 = arith.addf %22, %24 : vector<8x64xf32>
    %c0_19 = arith.constant 0 : index
    %c0_20 = arith.constant 0 : index
    %c0_21 = arith.constant 0 : index
    %26 = vector.load %arg10[%c0_19, %c0_20, %c0_21] : memref<1x8x64xf32, #tpu.memory_space<vmem>>, vector<1x8x64xf32>
    %27 = vector.shape_cast %26 : vector<1x8x64xf32> to vector<8x64xf32>
    %28 = vector.shape_cast %25 : vector<8x64xf32> to vector<1x8x64xf32>
    tpu.vector_store %arg10[%c0_19, %c0_20, %c0_21], %28 {strides = array<i32>} : memref<1x8x64xf32, #tpu.memory_space<vmem>>, vector<1x8x64xf32>,
    return
  }
  func.func @transform_0(%arg0: i32, %arg1: i32) -> (i32, i32, i32) {
    %c0_i32 = arith.constant 0 : i32
    %c0_i32_0 = arith.constant 0 : i32
    return %arg0, %c0_i32, %arg1 : i32, i32, i32
  }
  func.func @transform_1(%arg0: i32, %arg1: i32) -> (i32, i32) {
    %c0_i32 = arith.constant 0 : i32
    %c0_i32_0 = arith.constant 0 : i32
    return %c0_i32, %arg1 : i32, i32
  }
  func.func @transform_2(%arg0: i32, %arg1: i32) -> (i32, i32) {
    %c0_i32 = arith.constant 0 : i32
    %c0_i32_0 = arith.constant 0 : i32
    %c0_i32_1 = arith.constant 0 : i32
    return %c0_i32, %c0_i32_0 : i32, i32
  }
  func.func @transform_3(%arg0: i32, %arg1: i32) -> (i32, i32) {
    %c0_i32 = arith.constant 0 : i32
    %c0_i32_0 = arith.constant 0 : i32
    %c0_i32_1 = arith.constant 0 : i32
    return %c0_i32, %c0_i32_0 : i32, i32
  }
  func.func @transform_4(%arg0: i32, %arg1: i32) -> (i32, i32) {
    %c0_i32 = arith.constant 0 : i32
    %c0_i32_0 = arith.constant 0 : i32
    %c0_i32_1 = arith.constant 0 : i32
    return %c0_i32, %c0_i32_0 : i32, i32
  }
  func.func @transform_5(%arg0: i32, %arg1: i32) -> (i32, i32) {
    %c0_i32 = arith.constant 0 : i32
    %c0_i32_0 = arith.constant 0 : i32
    %c0_i32_1 = arith.constant 0 : i32
    return %c0_i32, %c0_i32_0 : i32, i32
  }
  func.func @transform_6(%arg0: i32, %arg1: i32) -> (i32, i32) {
    %c0_i32 = arith.constant 0 : i32
    %c0_i32_0 = arith.constant 0 : i32
    %c0_i32_1 = arith.constant 0 : i32
    return %c0_i32, %c0_i32_0 : i32, i32
  }
  func.func @transform_7(%arg0: i32, %arg1: i32) -> (i32, i32) {
    %c0_i32 = arith.constant 0 : i32
    %c0_i32_0 = arith.constant 0 : i32
    %c0_i32_1 = arith.constant 0 : i32
    return %c0_i32, %c0_i32_0 : i32, i32
  }
  func.func @transform_8(%arg0: i32, %arg1: i32) -> (i32, i32, i32) {
    %c0_i32 = arith.constant 0 : i32
    %c0_i32_0 = arith.constant 0 : i32
    return %arg0, %c0_i32, %arg1 : i32, i32, i32
  }
}

</mosaic_0001>

<bundles_post_ra>
// kernel: tpu_custom_call.1
= control target key start
LH: loop header
LB: loop body
LE: loop exit
PB: predicated region body
PF: predicated region fallthrough
CT: control target
= control target key end

     0   :  { %13 = vsyncpa [#allocation3], 0  ;;  %s1021_s0 = inlined_call_operand.vmem [shape: f32[2,36,64], index: 0, kind: input, shape index: {}]   ;;  %s1022_s1 = inlined_call_operand.vmem [shape: f32[4,64], index: 1, kind: input, shape index: {}]   ;;  %s1023_s2 = inlined_call_operand.vmem [shape: f32[4,36], index: 2, kind: input, shape index: {}]   ;;  %s1024_s3 = inlined_call_operand.vmem [shape: f32[8,4], index: 3, kind: input, shape index: {}]   ;;  %s1025_s4 = inlined_call_operand.vmem [shape: f32[4,1], index: 4, kind: input, shape index: {}]   ;;  %s1026_s5 = inlined_call_operand.vmem [shape: f32[8,1], index: 5, kind: input, shape index: {}]   ;;  %s1027_s6 = inlined_call_operand.vmem [shape: f32[8,1], index: 6, kind: input, shape index: {}]   ;;  %s1028_s7 = inlined_call_operand.vmem [shape: f32[8,1], index: 7, kind: input, shape index: {}]   ;;  %s1029_s8 = inlined_call_operand.hbm [shape: f32[2,8,64], index: 8, kind: output, shape index: {}]  }
   0x1   :  { %15 = vsyncpa [#allocation3 + $0x1], 0  ;;  %s886_s27 = smov 0   ;;  %s888_s28 = smov 0  }
   0x2   :  { %s890_s29 = smov 0   ;;  %s892_s30 = smov 0  }
   0x3   :  { %s894_s9 = smov 0   ;;  %s896_s10 = smov 0  }
   0x4 LB: > { %s646_s11 = sadd.s32 4294967295, %s834_s10   ;;  %s647_s12 = sadd.s32 4294967294, %s834_s10   ;;  %s834_s10 = sphi %s896_s10, %s21_s10   ;;  %s830_s9 = sphi %s894_s9, %s1036_s9   ;;  %s826_s30 = sphi %s892_s30, %s1035_s30   ;;  %s822_s29 = sphi %s890_s29, %s1034_s29   ;;  %s818_s28 = sphi %s888_s28, %s1033_s28   ;;  %s814_s27 = sphi %s886_s27, %s1032_s27  }
   0x5   : > { %s33_s13 = sadd.s32 1, %s830_s9  ;;  %s222_s14 = sadd.s32 1, %s822_s29 }
   0x6   : > { %p35_p0 = scmp.ge.s32.totalorder %s33_s13, 2  ;;  %p232_p1 = scmp.ne.s32.totalorder %s822_s29, %s818_s28 }
   0x7   : > { %p233_p2 = scmp.eq.s32.totalorder %s646_s11, 1  ;;  %p238_p3 = scmp.ne.s32.totalorder %s818_s28, %s814_s27 }
   0x8   : > { %s1038_s13 = smov (%p35_p0, %s33_s13), 0  ;;  %p239_p5 = scmp.eq.s32.totalorder %s647_s12, 1 }
   0x9   : > { %p926_p4 = por %p233_p2, %p232_p1  ;;  %s217_s16 = ssub.s32 %s830_s9, %s1038_s13 }
   0xa   : > { %p651_p6 = scmp.ge.s32.totalorder %s834_s10, 1  ;;  %p220_p7 = scmp.eq.s32.totalorder %s217_s16, 0 }
   0xb   : > { %p933_p8 = por %p239_p5, %p238_p3  ;;  %p293_p9 = scmp.lt.s32.totalorder %s834_s10, 3 }
   0xc   : > { %s939_s18 = scalar_select %p220_p7, %s822_s29, %s222_s14  }
   0xd   : > { %p294_p10 = pnand %p651_p6, %p293_p9 }
   0xe   : > { %p334_p11 = scmp.lt.s32.totalorder (!%p294_p10), %s826_s30, 1  ;;  %v836_v0 = vmov (!%p294_p10), 0.0|0.0   ;;  %vm837_vm0 = vmmov (!%p294_p10), 0   ;;  %v838_v1 = vmov (!%p294_p10), 0.0   ;;  %v432_v2 = vld [vmem:[%s1025_s4] sm:$0xf] (!%p294_p10) }
   0xf   : > { %297 = sbr.rel (%p294_p10) target bundleno = 490 (0x1ea), region = 52  ;;  %688 = vmatprep.subr.bf16.mxu0 (!%p294_p10), %v836_v0  ;;  %680 = vmatprep.mubr.msk.f32.mxu0 (!%p294_p10), %vm837_vm0, %v838_v1  ;;  %v839_v3 = vmov (!%p294_p10), 0   ;;  %v441_v4 = vld [vmem:[%s1026_s5] sm:$0xff] (!%p294_p10)  ;;  %vm357_vm1 = vcmask (!%p294_p10), 1043456   ;;  %vm353_vm2 = vcmask (!%p294_p10), 293888   ;;  %vm447_vm4 = vcmask (!%p294_p10), 31744  }
  0x10   : > { %754 = vset.pattern.permute.xlu0 (!%p294_p10), %v839_v3  ;;  %683 = vmatprep.subr.mxu1 (!%p294_p10), %v838_v1  ;;  %v346_v12 = vld [vmem:[%s1023_s2] sm:$0xf] (!%p294_p10)  ;;  %s331_s26 = sand.u32 (!%p294_p10), 1, %s818_s28   ;;  %s659_s12 = sshll.u32 (!%p294_p10), %s826_s30, 7  ;;  %vm540_vm6 = vcmask (!%p294_p10), 523264  }
  0x11   : > { %435 = vperm.xlu0 (!%p294_p10), %754, %v432_v2   ;;  %685 = vmatprep.mubr.msk.f32.mxu1 (!%p294_p10), %vm837_vm0, %v838_v1  ;;  %v525_v13 = vld [vmem:[%s1027_s6] sm:$0xff] (!%p294_p10) }
  0x12   : > { %755 = vset.pattern.permute.xlu1 (!%p294_p10), %v839_v3  ;;  %v533_v14 = vld [vmem:[%s1028_s7] sm:$0xff] (!%p294_p10) }
  0x13   : > { %528 = vperm.xlu1 (!%p294_p10), %755, %v525_v13   ;;  %v352_v15 = vld [vmem:[%s1022_s1] sm:$0xf] (!%p294_p10) }
  0x14   : > { %v440_v21 = vld [vmem:[%s1024_s3] sm:$0xff] (!%p294_p10) }
  0x15   : > { %444 = vperm.xlu0 (!%p294_p10), %754, %v441_v4  }
  0x16   : > { %s335_s21 = scalar_select %p334_p11, %s826_s30, 1 }
  0x17   : > { %536 = vperm.xlu1 %755, %v533_v14   ;;  %s840_s30 = smov [#allocation2]  }
  0x18   : > { %s694_s22 = smul.u32 40, %s335_s21  ;;  %s974_s21 = scalar_lea.hbm %s1029_s8, %s659_s12 }
  0x19   : > { %s760_s24 = sshll.u32 %s840_s30, 4  ;;  %s761_s24 = int_to_ptr.vmem [resolvable:$false] %s760_s24 }
  0x1a   : > { %s341_s11 = scalar_lea.vmem %s1021_s0, %s694_s22  ;;  %s543_s22 = scalar_lea.sflag [#allocation3], %s331_s26 }
  0x1b   : > { %v347_v5 = vld [vmem:[%s341_s11] sm:$0xff]  ;;  %v348_v6 = vld [vmem:[%s341_s11 + $0x8] sm:$0xff]  ;;  %v349_v7 = vld [vmem:[%s341_s11 + $0x10] sm:$0xff]  ;;  %s762_s25 = scalar_lea.vmem %s761_s24, 256 }
  0x1c   : > { %v689_v8 = vpack.c.bf16 %v348_v6, %v347_v5  ;;  %v350_v9 = vld [vmem:[%s341_s11 + $0x18] sm:$0xff]  ;;  %v351_v11 = vld [vmem:[%s341_s11 + $0x20] sm:$0xf]  ;;  %s652_s11 = sshll.u32 %s331_s26, 3 }
  0x1d   : > { %v692_v10 = vpack.c.bf16 %v350_v9, %v349_v7  ;;  %s333_s14 = scalar_lea.vmem [#allocation2], %s652_s11 }
  0x1e   : > { %690 = vmatpush3.bf16.msra.mxu0 %v689_v8  ;;  %s557_s16 = sshll.u32 %s333_s14, 4  ;;  %s976_s16 = int_to_ptr.vmem [resolvable:$true] %s557_s16 }
  0x1f   : > { %691 = vmatprep.subr.bf16.mxu0 %v836_v0  ;;  %s756_s23 = scalar_lea.vmem %s976_s16, 128  ;;  %p763_p1 = scmp.lt.s32.totalorder %s976_s16, %s761_s24 }
  0x20   : > { %p757_p12 = scmp.ne.s32.totalorder %s976_s16, %s756_s23  ;;  %p764_p2 = scmp.lt.s32.totalorder %s762_s25, %s756_s23 }
  0x22   : > { %693 = vmatpush3.bf16.msra.mxu0 %v692_v10  ;;  %p758_p13 = pnand %p757_p12, %p926_p4  ;;  %p765_p3 = por %p764_p2, %p763_p1 }
  0x23   : > { %678 = vmatprep.subr.mxu0 %v838_v1 }
  0x24   : > { %p759_p0 = pneg %p758_p13 }
  0x26   : > { %679 = vmatpush3.msk.msra.mxu0 %vm357_vm1, %v351_v11  ;;  %p766_p5 = pnand %p765_p3, %p759_p0 }
  0x27   : > { %681 = vmatmul.mubr.msk.f32.vlgmr.msra.gmra.mrb[0].mxu0 %vm353_vm2, %v346_v12 }
  0x90   : > { %v436_v19 = vpop.permute.xlu0 %435 }
  0x92   : > { %v529_v23 = vpop.permute.xlu1 %528 }
  0x94   : > { %v445_v24 = vpop.permute.xlu0 %444 }
  0x96   : > { %v537_v29 = vpop.permute.xlu1 %536 }
  0xfa   : > { %v427_v16 = vpop.f32.mrb[0].mxu0 }
  0xfb   : > { %v428_v17 = vadd.f32 %v427_v16, %v352_v15  ;;  %v682_v18 = vpop.f32.mrb[1].mxu0 }
  0xfd   : > { %v438_v20 = vmul.f32 %v436_v19, %v428_v17  ;;  %vm431_vm3 = vcmp.ge.f32.partialorder %v428_v17, 0.0 }
  0xff   : > { %v439_v22 = vsel %vm431_vm3, %v428_v17, %v438_v20 }
 0x100   : > { %684 = vmatpush3.msk.msra.mxu1 %vm357_vm1, %v439_v22 }
 0x101   : > { %686 = vmatmul.mubr.msk.f32.vlgmr.msra.gmra.mrb[0].mxu1 %vm447_vm4, %v440_v21 }
 0x1d4   : > { %v520_v25 = vpop.f32.mrb[0].mxu1 }
 0x1d5   : > { %v521_v26 = vadd.f32 %v520_v25, %v445_v24  ;;  %v687_v27 = vpop.f32.mrb[1].mxu1 }
 0x1d7   : > { %v531_v28 = vmul.f32 %v529_v23, %v521_v26  ;;  %vm524_vm5 = vcmp.ge.f32.partialorder %v521_v26, 0.0 }
 0x1d9   : > { %v532_v30 = vsel %vm524_vm5, %v521_v26, %v531_v28 }
 0x1da   : > { %v539_v31 = vadd.f32 %v537_v29, %v532_v30 }
 0x1dc   : > { %541 = vst.msk [vmem:[%s333_s14] sm:$0xff] %vm540_vm6, %v539_v31 }
 0x1dd   : > { %769 = shalt.err (!%p766_p5)
}
 0x1de   : > { %s770_s26 = scalar_lea.hbm %s974_s21, 128  ;;  %s774_s14 = scalar_lea.hbm %s1029_s8, 256 }
 0x1df   : > { %p771_p6 = scmp.ne.s32.totalorder %s974_s21, %s770_s26  ;;  %p775_p10 = scmp.lt.u32.totalorder %s974_s21, %s1029_s8 }
 0x1e0   : > { %p776_p11 = scmp.lt.u32.totalorder %s774_s14, %s770_s26  ;;  %p778_p13 = scmp.lt.u32.totalorder %s770_s26, %s974_s21 }
 0x1e1   : > { %p772_p7 = pnand %p771_p6, %p926_p4 }
 0x1e2   : > { %p777_p12 = por %p776_p11, %p775_p10 }
 0x1e3   : > { %p773_p9 = pneg %p772_p7 }
 0x1e4   : > { %p779_p0 = por %p778_p13, %p777_p12 }
 0x1e6   : > { %p780_p1 = pnand %p779_p0, %p773_p9 }
 0x1e8   : > { %783 = shalt.err (!%p780_p1)
}
 0x1e9   : > { %695 = dma.vmem_to_hbm [thread:$0]  (%p926_p4), %s976_s16, 128, %s974_s21, %s543_s22  }
 0x1ea PF: > { %p701_p2 = scmp.ge.s32.totalorder %s834_s10, 2  ;;  %s569_s23 = sand.u32 1, %s814_s27  }
 0x1eb   : > { %s570_s30 = scalar_lea.sflag [#allocation3], %s569_s23 }
 0x1ec   : > { %p698_p3 = pnand %p701_p2, %p933_p8 }
 0x1ee   : > { %809 = dma.done.wait (!%p698_p3), %s570_s30, 128  }
 0x1ef   : > { %811 = vsyncadd (!%p698_p3), %s570_s30, 4294967168  ;;  %s21_s10 = sadd.s32 1, %s834_s10   ;;  %s1032_s27 = smov %s818_s28 }
 0x1f0   : > { %p18_p5 = scmp.ge.s32.totalorder %s21_s10, 4   ;;  %s1033_s28 = smov %s822_s29 }
 0x1f1   : > { %s1034_s29 = smov %s939_s18  ;;  %s1035_s30 = smov %s830_s9 }
 0x1f2   : > { %s1036_s9 = smov %s1038_s13  ;;  %20 = sbr.rel (!%p18_p5) target bundleno = 4 (0x4), region = 90 }
 0x1f9   :  { %575 = vsyncpa [#allocation3], 1 }
 0x1fa   :  { %577 = vsyncpa [#allocation3 + $0x1], 1 }

</bundles_post_ra>
